<compile_context>
chip_gen: v7x
topology: tpu7x:2x2x1
jax: 0.10.0
libtpu: 0.0.40
codegen_flags: <defaults>
</compile_context>

<pallas_src>
import functools

import jax
import jax.numpy as jnp
from jax.experimental import pallas as pl
from jax.experimental.pallas import tpu as pltpu

_OUT_PAD = 128  # lane-dense padding of the width-1 discriminator head


def _leaky_relu(x, slope=0.2):
    return jnp.where(x > 0, x, slope * x)


def _disc_kernel(x_ref, w1_ref, b1_ref, w2_ref, b2_ref, w3_ref, b3_ref, o_ref):
    # Layer 1: Linear(latent -> hidden) + LeakyReLU(0.2)   (bf16 MXU, f32 acc)
    h = jnp.dot(x_ref[...], w1_ref[...], preferred_element_type=jnp.float32)
    h = _leaky_relu(h + b1_ref[...])
    # TODO(synk): Dropout(0.1) is identity in eval mode; training-mode dropout
    # (pltpu.prng_seed / pltpu.prng_random_bits) intentionally not implemented.

    # Layer 2: Linear(hidden -> hidden) + LeakyReLU(0.2)
    h = jnp.dot(h.astype(w2_ref.dtype), w2_ref[...],
                preferred_element_type=jnp.float32)
    h = _leaky_relu(h + b2_ref[...])

    # Layer 3: Linear(hidden -> 1), padded to 128 lanes; then Sigmoid.
    y = jnp.dot(h.astype(w3_ref.dtype), w3_ref[...],
                preferred_element_type=jnp.float32)
    y = y + b3_ref[...]
    # sigmoid(y) = 1 / (1 + exp(-y)): exp on the EUP, approx reciprocal on the
    # EUP vrcp slot -> essentially free alongside the VPU work.
    o_ref[...] = pl.reciprocal(1.0 + jnp.exp(-y), approx=True).astype(o_ref.dtype)


def _round_up(n, m):
    return ((n + m - 1) // m) * m


@functools.partial(jax.jit, static_argnames=("block_b",))
def aae_mnist_discriminator_forward(x, w1, b1, w2, b2, w3, b3, *, block_b=128):
    """Forward pass of AAE_MNIST_Discriminator.

    x : (B, latent) float32
    w1: (latent, hidden)   b1: (1, hidden)
    w2: (hidden, hidden)   b2: (1, hidden)
    w3: (hidden, 1)        b3: (1, 1)
    Returns sigmoid probabilities of shape (B, 1), float32.
    """
    B, latent = x.shape
    hidden = w1.shape[1]

    # Lane-dense head: pad (hidden, 1) -> (hidden, 128) and (1, 1) -> (1, 128).
    w3p = jnp.zeros((hidden, _OUT_PAD), w3.dtype).at[:, :1].set(w3)
    b3p = jnp.zeros((1, _OUT_PAD), jnp.float32).at[:, :1].set(b3)

    # Batch tiling: block of `block_b` rows (multiple of 16 for bf16 sublanes).
    tb = min(block_b, _round_up(B, 16))
    b_pad = _round_up(B, tb)
    if b_pad != B:
        x = jnp.pad(x, ((0, b_pad - B), (0, 0)))
    grid = (b_pad // tb,)

    # bf16 matmul operands; accumulation stays f32 inside the kernel.
    x_bf = x.astype(jnp.bfloat16)
    w1_bf = w1.astype(jnp.bfloat16)
    w2_bf = w2.astype(jnp.bfloat16)
    w3_bf = w3p.astype(jnp.bfloat16)

    flops = 2 * b_pad * (latent * hidden + hidden * hidden + hidden * _OUT_PAD)
    bytes_accessed = (
        x_bf.size * 2 + w1_bf.size * 2 + w2_bf.size * 2 + w3_bf.size * 2
        + b1.size * 4 + b2.size * 4 + b3p.size * 4 + b_pad * _OUT_PAD * 4)

    pinned = lambda i: (0, 0)
    out = pl.pallas_call(
        _disc_kernel,
        out_shape=jax.ShapeDtypeStruct((b_pad, _OUT_PAD), jnp.float32),
        grid=grid,
        in_specs=[
            pl.BlockSpec((tb, latent), lambda i: (i, 0)),  # x: tiled over batch
            pl.BlockSpec((latent, hidden), pinned),        # w1 (VMEM-resident)
            pl.BlockSpec((1, hidden), pinned),             # b1
            pl.BlockSpec((hidden, hidden), pinned),        # w2
            pl.BlockSpec((1, hidden), pinned),             # b2
            pl.BlockSpec((hidden, _OUT_PAD), pinned),      # w3 (lane-padded)
            pl.BlockSpec((1, _OUT_PAD), pinned),           # b3 (lane-padded)
        ],
        out_specs=pl.BlockSpec((tb, _OUT_PAD), lambda i: (i, 0)),
        compiler_params=pltpu.CompilerParams(
            dimension_semantics=("parallel",),
        ),
        cost_estimate=pl.CostEstimate(
            flops=flops,
            transcendentals=b_pad * _OUT_PAD,
            bytes_accessed=bytes_accessed,
        ),
    )(x_bf, w1_bf, b1, w2_bf, b2, w3_bf, b3p)

    return out[:B, :1]


def init_params(key, latent_size, hidden_size):
    """PyTorch nn.Linear default init; weights stored transposed (in, out)."""
    ks = jax.random.split(key, 6)
    s1 = 1.0 / jnp.sqrt(latent_size)
    s2 = 1.0 / jnp.sqrt(hidden_size)
    w1 = jax.random.uniform(ks[0], (latent_size, hidden_size), jnp.float32, -s1, s1)
    b1 = jax.random.uniform(ks[1], (1, hidden_size), jnp.float32, -s1, s1)
    w2 = jax.random.uniform(ks[2], (hidden_size, hidden_size), jnp.float32, -s2, s2)
    b2 = jax.random.uniform(ks[3], (1, hidden_size), jnp.float32, -s2, s2)
    w3 = jax.random.uniform(ks[4], (hidden_size, 1), jnp.float32, -s2, s2)
    b3 = jax.random.uniform(ks[5], (1, 1), jnp.float32, -s2, s2)
    return w1, b1, w2, b2, w3, b3


def _ref_forward(x, params):
    w1, b1, w2, b2, w3, b3 = params
    h = _leaky_relu(x @ w1 + b1)
    h = _leaky_relu(h @ w2 + b2)   # Dropout is identity in eval mode
    return jax.nn.sigmoid(h @ w3 + b3)


if __name__ == "__main__":
    # Small-but-grid-exercising shapes consistent with the module's forward:
    # x is (batch, latent_size); batch=256 -> two 128-row "parallel" blocks.
    batch, latent_size, hidden_size = 256, 32, 256

    key = jax.random.PRNGKey(0)
    kx, kp = jax.random.split(key)
    x = jax.random.normal(kx, (batch, latent_size), jnp.float32)
    params = init_params(kp, latent_size, hidden_size)

    out = aae_mnist_discriminator_forward(x, *params)
    out = jax.block_until_ready(out)

    ref = _ref_forward(x, params)
    assert out.shape == (batch, 1), out.shape
    assert bool(jnp.all(jnp.isfinite(out)))
    # bf16 matmul operands + approx reciprocal vs. pure-f32 reference.
    max_err = float(jnp.max(jnp.abs(out - ref)))
    assert jnp.allclose(out, ref, atol=2e-2, rtol=2e-2), max_err

    print("KERNEL_OK")
</pallas_src>

<mosaic_0001>
module attributes {stable_mosaic.version = 11 : i64} {
  func.func @_disc_kernel(%arg0: i32, %arg1: memref<128x32xbf16, #tpu.memory_space<vmem>>, %arg2: memref<32x256xbf16, #tpu.memory_space<vmem>>, %arg3: memref<1x256xf32, #tpu.memory_space<vmem>>, %arg4: memref<256x256xbf16, #tpu.memory_space<vmem>>, %arg5: memref<1x256xf32, #tpu.memory_space<vmem>>, %arg6: memref<256x128xbf16, #tpu.memory_space<vmem>>, %arg7: memref<1x128xf32, #tpu.memory_space<vmem>>, %arg8: memref<128x128xf32, #tpu.memory_space<vmem>>) attributes {dimension_semantics = [#tpu.dimension_semantics<parallel>], iteration_bounds = array<i64: 2>, scalar_prefetch = 0 : i64, scratch_operands = 0 : i64, tpu.core_type = #tpu.core_type<tc>, window_params = [{transform_indices = @transform_0, window_bounds = array<i64: 128, 32>}, {pipeline_mode = #tpu.pipeline_mode<synchronous>, transform_indices = @transform_1, window_bounds = array<i64: 32, 256>}, {pipeline_mode = #tpu.pipeline_mode<synchronous>, transform_indices = @transform_2, window_bounds = array<i64: 1, 256>}, {pipeline_mode = #tpu.pipeline_mode<synchronous>, transform_indices = @transform_3, window_bounds = array<i64: 256, 256>}, {pipeline_mode = #tpu.pipeline_mode<synchronous>, transform_indices = @transform_4, window_bounds = array<i64: 1, 256>}, {pipeline_mode = #tpu.pipeline_mode<synchronous>, transform_indices = @transform_5, window_bounds = array<i64: 256, 128>}, {pipeline_mode = #tpu.pipeline_mode<synchronous>, transform_indices = @transform_6, window_bounds = array<i64: 1, 128>}, {transform_indices = @transform_7, window_bounds = array<i64: 128, 128>}]} {
    %c0 = arith.constant 0 : index
    %c0_0 = arith.constant 0 : index
    %0 = vector.load %arg1[%c0, %c0_0] : memref<128x32xbf16, #tpu.memory_space<vmem>>, vector<128x32xbf16>
    %c0_1 = arith.constant 0 : index
    %c0_2 = arith.constant 0 : index
    %1 = vector.load %arg2[%c0_1, %c0_2] : memref<32x256xbf16, #tpu.memory_space<vmem>>, vector<32x256xbf16>
    %cst = arith.constant dense<0.000000e+00> : vector<128x256xf32>
    %2 = tpu.matmul %0, %1, %cst {dimension_numbers = #tpu.dot_dimension_numbers<[1], [0], [0], [1], [0, 0, 1, 1], [], []>} : vector<128x32xbf16>, vector<32x256xbf16>, vector<128x256xf32> -> vector<128x256xf32>
    %c0_3 = arith.constant 0 : index
    %c0_4 = arith.constant 0 : index
    %3 = vector.load %arg3[%c0_3, %c0_4] : memref<1x256xf32, #tpu.memory_space<vmem>>, vector<1x256xf32>
    %4 = vector.broadcast %3 : vector<1x256xf32> to vector<128x256xf32>
    %5 = arith.addf %2, %4 : vector<128x256xf32>
    %cst_5 = arith.constant 0.000000e+00 : f32
    %6 = vector.broadcast %cst_5 : f32 to vector<128x256xf32>
    %7 = arith.cmpf ogt, %5, %6 : vector<128x256xf32>
    %cst_6 = arith.constant 2.000000e-01 : f32
    %8 = vector.broadcast %cst_6 : f32 to vector<128x256xf32>
    %9 = arith.mulf %8, %5 : vector<128x256xf32>
    %10 = arith.select %7, %5, %9 : vector<128x256xi1>, vector<128x256xf32>
    %11 = arith.truncf %10 : vector<128x256xf32> to vector<128x256xbf16>
    %c0_7 = arith.constant 0 : index
    %c0_8 = arith.constant 0 : index
    %12 = vector.load %arg4[%c0_7, %c0_8] : memref<256x256xbf16, #tpu.memory_space<vmem>>, vector<256x256xbf16>
    %cst_9 = arith.constant dense<0.000000e+00> : vector<128x256xf32>
    %13 = tpu.matmul %11, %12, %cst_9 {dimension_numbers = #tpu.dot_dimension_numbers<[1], [0], [0], [1], [0, 0, 1, 1], [], []>} : vector<128x256xbf16>, vector<256x256xbf16>, vector<128x256xf32> -> vector<128x256xf32>
    %c0_10 = arith.constant 0 : index
    %c0_11 = arith.constant 0 : index
    %14 = vector.load %arg5[%c0_10, %c0_11] : memref<1x256xf32, #tpu.memory_space<vmem>>, vector<1x256xf32>
    %15 = vector.broadcast %14 : vector<1x256xf32> to vector<128x256xf32>
    %16 = arith.addf %13, %15 : vector<128x256xf32>
    %cst_12 = arith.constant 0.000000e+00 : f32
    %17 = vector.broadcast %cst_12 : f32 to vector<128x256xf32>
    %18 = arith.cmpf ogt, %16, %17 : vector<128x256xf32>
    %cst_13 = arith.constant 2.000000e-01 : f32
    %19 = vector.broadcast %cst_13 : f32 to vector<128x256xf32>
    %20 = arith.mulf %19, %16 : vector<128x256xf32>
    %21 = arith.select %18, %16, %20 : vector<128x256xi1>, vector<128x256xf32>
    %22 = arith.truncf %21 : vector<128x256xf32> to vector<128x256xbf16>
    %c0_14 = arith.constant 0 : index
    %c0_15 = arith.constant 0 : index
    %23 = vector.load %arg6[%c0_14, %c0_15] : memref<256x128xbf16, #tpu.memory_space<vmem>>, vector<256x128xbf16>
    %cst_16 = arith.constant dense<0.000000e+00> : vector<128x128xf32>
    %24 = tpu.matmul %22, %23, %cst_16 {dimension_numbers = #tpu.dot_dimension_numbers<[1], [0], [0], [1], [0, 0, 1, 1], [], []>} : vector<128x256xbf16>, vector<256x128xbf16>, vector<128x128xf32> -> vector<128x128xf32>
    %c0_17 = arith.constant 0 : index
    %c0_18 = arith.constant 0 : index
    %25 = vector.load %arg7[%c0_17, %c0_18] : memref<1x128xf32, #tpu.memory_space<vmem>>, vector<1x128xf32>
    %26 = vector.broadcast %25 : vector<1x128xf32> to vector<128x128xf32>
    %27 = arith.addf %24, %26 : vector<128x128xf32>
    %cst_19 = arith.constant 0.000000e+00 : f32
    %28 = vector.broadcast %cst_19 : f32 to vector<128x128xf32>
    %29 = arith.subf %28, %27 : vector<128x128xf32>
    %30 = math.exp %29 : vector<128x128xf32>
    %cst_20 = arith.constant 1.000000e+00 : f32
    %31 = vector.broadcast %cst_20 : f32 to vector<128x128xf32>
    %32 = arith.addf %31, %30 : vector<128x128xf32>
    %33 = tpu.reciprocal %32 {approx = true} : vector<128x128xf32> -> vector<128x128xf32>
    %c0_21 = arith.constant 0 : index
    %c0_22 = arith.constant 0 : index
    %34 = vector.load %arg8[%c0_21, %c0_22] : memref<128x128xf32, #tpu.memory_space<vmem>>, vector<128x128xf32>
    tpu.vector_store %arg8[%c0_21, %c0_22], %33 {strides = array<i32>} : memref<128x128xf32, #tpu.memory_space<vmem>>, vector<128x128xf32>,
    return
  }
  func.func @transform_0(%arg0: i32) -> (i32, i32) {
    %c0_i32 = arith.constant 0 : i32
    %c0_i32_0 = arith.constant 0 : i32
    return %arg0, %c0_i32 : i32, i32
  }
  func.func @transform_1(%arg0: i32) -> (i32, i32) {
    %c0_i32 = arith.constant 0 : i32
    %c0_i32_0 = arith.constant 0 : i32
    %c0_i32_1 = arith.constant 0 : i32
    return %c0_i32, %c0_i32_0 : i32, i32
  }
  func.func @transform_2(%arg0: i32) -> (i32, i32) {
    %c0_i32 = arith.constant 0 : i32
    %c0_i32_0 = arith.constant 0 : i32
    %c0_i32_1 = arith.constant 0 : i32
    return %c0_i32, %c0_i32_0 : i32, i32
  }
  func.func @transform_3(%arg0: i32) -> (i32, i32) {
    %c0_i32 = arith.constant 0 : i32
    %c0_i32_0 = arith.constant 0 : i32
    %c0_i32_1 = arith.constant 0 : i32
    return %c0_i32, %c0_i32_0 : i32, i32
  }
  func.func @transform_4(%arg0: i32) -> (i32, i32) {
    %c0_i32 = arith.constant 0 : i32
    %c0_i32_0 = arith.constant 0 : i32
    %c0_i32_1 = arith.constant 0 : i32
    return %c0_i32, %c0_i32_0 : i32, i32
  }
  func.func @transform_5(%arg0: i32) -> (i32, i32) {
    %c0_i32 = arith.constant 0 : i32
    %c0_i32_0 = arith.constant 0 : i32
    %c0_i32_1 = arith.constant 0 : i32
    return %c0_i32, %c0_i32_0 : i32, i32
  }
  func.func @transform_6(%arg0: i32) -> (i32, i32) {
    %c0_i32 = arith.constant 0 : i32
    %c0_i32_0 = arith.constant 0 : i32
    %c0_i32_1 = arith.constant 0 : i32
    return %c0_i32, %c0_i32_0 : i32, i32
  }
  func.func @transform_7(%arg0: i32) -> (i32, i32) {
    %c0_i32 = arith.constant 0 : i32
    %c0_i32_0 = arith.constant 0 : i32
    return %arg0, %c0_i32 : i32, i32
  }
}

</mosaic_0001>

<bundles_post_ra>
// kernel: aae_mnist_discriminator_forward.1
= control target key start
LH: loop header
LB: loop body
LE: loop exit
PB: predicated region body
PF: predicated region fallthrough
CT: control target
= control target key end

     0   :  { %s1782_s24 = smov 0   ;;  %s2114_s0 = inlined_call_operand.vmem [shape: bf16[256,32], index: 0, kind: input, shape index: {}]   ;;  %s2115_s1 = inlined_call_operand.vmem [shape: bf16[32,256], index: 1, kind: input, shape index: {}]   ;;  %s2116_s2 = inlined_call_operand.vmem [shape: f32[1,256], index: 2, kind: input, shape index: {}]   ;;  %s2117_s3 = inlined_call_operand.vmem [shape: bf16[256,256], index: 3, kind: input, shape index: {}]   ;;  %s2118_s4 = inlined_call_operand.vmem [shape: f32[1,256], index: 4, kind: input, shape index: {}]   ;;  %s2119_s5 = inlined_call_operand.vmem [shape: bf16[256,128], index: 5, kind: input, shape index: {}]   ;;  %s2120_s6 = inlined_call_operand.vmem [shape: f32[1,128], index: 6, kind: input, shape index: {}]   ;;  %s2121_s7 = inlined_call_operand.vmem [shape: f32[256,128], index: 7, kind: output, shape index: {}]  }
   0x1 LB: > { %s1438_s25 = sadd.s32 4294967295, %s1739_s24   ;;  %p1442_p0 = scmp.ge.s32.totalorder %s1739_s24, 1  ;;  %s1739_s24 = sphi %s1782_s24, %s17_s24  }
   0x2   : > { %p238_p1 = scmp.lt.s32.totalorder %s1739_s24, 3 }
   0x4   : > { %p239_p2 = pnand %p1442_p0, %p238_p1 }
   0x5   : > { %v1591_v0 = vld [vmem:[%s2115_s1 + $0x4] ss:$8 sps:$4 sm:$0xff] (!%p239_p2)   ;;  %s1443_s28 = sshll.u32 (!%p239_p2), %s1438_s25, 4  ;;  %v1593_v1 = vld [vmem:[%s2115_s1] ss:$8 sps:$4 sm:$0xff] (!%p239_p2)   ;;  %v1741_v2 = vmov (!%p239_p2), 0   ;;  %v305_v59 = vlaneseq (!%p239_p2) }
   0x6   : > { %242 = sbr.rel (%p239_p2) target bundleno = 767 (0x2ff), region = 48  ;;  %432 = vmatprep.mubr.bf16.mxu0 (!%p239_p2), %v1741_v2  ;;  %p271_p3 = scmp.lt.s32.totalorder (!%p239_p2), %s1443_s28, 31  ;;  %400 = vmatprep.subr.bf16.mxu0 (!%p239_p2), %v1591_v0  ;;  %v1594_v3 = vld [vmem:[%s2115_s1 + $0x14] ss:$8 sps:$4 sm:$0xff] (!%p239_p2)   ;;  %v1596_v4 = vld [vmem:[%s2115_s1 + $0x10] ss:$8 sps:$4 sm:$0xff] (!%p239_p2)  }
   0x7   : > { %401 = vmatpush1.bf16.msra.mxu0 (!%p239_p2), %v1593_v1  ;;  %v1605_v5 = vld [vmem:[%s2117_s3 + $0x4] ss:$8 sps:$4 sm:$0xff] (!%p239_p2)   ;;  %v1607_v6 = vld [vmem:[%s2117_s3] ss:$8 sps:$4 sm:$0xff] (!%p239_p2)   ;;  %v1608_v7 = vld [vmem:[%s2117_s3 + $0x14] ss:$8 sps:$4 sm:$0xff] (!%p239_p2)  }
   0x8   : > { %402 = vmatprep.subr.bf16.mxu0 (!%p239_p2), %v1594_v3  ;;  %829 = vmatprep.subr.bf16.mxu1 (!%p239_p2), %v1605_v5  ;;  %v1610_v8 = vld [vmem:[%s2117_s3 + $0x10] ss:$8 sps:$4 sm:$0xff] (!%p239_p2)   ;;  %v1611_v9 = vld [vmem:[%s2117_s3 + $0x24] ss:$8 sps:$4 sm:$0xff] (!%p239_p2)   ;;  %vm375_vm0 = vcmask (!%p239_p2), 261120   ;;  %v1972_v60 = vshrl.u32 (!%p239_p2), %v305_v59, 7 }
   0x9   : > { %830 = vmatpush1.bf16.msra.mxu1 (!%p239_p2), %v1607_v6  ;;  %v1613_v11 = vld [vmem:[%s2117_s3 + $0x20] ss:$8 sps:$4 sm:$0xff] (!%p239_p2)   ;;  %v1614_v13 = vld [vmem:[%s2117_s3 + $0x34] ss:$8 sps:$4 sm:$0xff] (!%p239_p2)   ;;  %v1616_v14 = vld [vmem:[%s2117_s3 + $0x30] ss:$8 sps:$4 sm:$0xff] (!%p239_p2)  }
   0xa   : > { %831 = vmatprep.subr.bf16.mxu1 (!%p239_p2), %v1608_v7  ;;  %v1617_v15 = vld [vmem:[%s2117_s3 + $0x44] ss:$8 sps:$4 sm:$0xff] (!%p239_p2)   ;;  %v1619_v16 = vld [vmem:[%s2117_s3 + $0x40] ss:$8 sps:$4 sm:$0xff] (!%p239_p2)   ;;  %v1620_v17 = vld [vmem:[%s2117_s3 + $0x54] ss:$8 sps:$4 sm:$0xff] (!%p239_p2)  }
   0xb   : > { %403 = vmatpush1.bf16.msra.mxu0 (!%p239_p2), %v1596_v4  ;;  %v1622_v19 = vld [vmem:[%s2117_s3 + $0x50] ss:$8 sps:$4 sm:$0xff] (!%p239_p2)   ;;  %v1623_v20 = vld [vmem:[%s2117_s3 + $0x64] ss:$8 sps:$4 sm:$0xff] (!%p239_p2)   ;;  %v1625_v21 = vld [vmem:[%s2117_s3 + $0x60] ss:$8 sps:$4 sm:$0xff] (!%p239_p2)  }
   0xc   : > { %v1626_v22 = vld [vmem:[%s2117_s3 + $0x74] ss:$8 sps:$4 sm:$0xff] (!%p239_p2)   ;;  %v1628_v24 = vld [vmem:[%s2117_s3 + $0x70] ss:$8 sps:$4 sm:$0xff] (!%p239_p2)   ;;  %v1629_v25 = vld [vmem:[%s2117_s3 + $0x84] ss:$8 sps:$4 sm:$0xff] (!%p239_p2)  }
   0xd   : > { %s2123_s28 = smov (!%p271_p3, %s1443_s28), 31  ;;  %832 = vmatpush1.bf16.msra.mxu1 %v1610_v8  ;;  %v1631_v26 = vld [vmem:[%s2117_s3 + $0x80] ss:$8 sps:$4 sm:$0xff]   ;;  %v1632_v27 = vld [vmem:[%s2117_s3 + $0x94] ss:$8 sps:$4 sm:$0xff]   ;;  %v307_v61 = vsub.s32 0, %v1972_v60 }
   0xe   : > { %s1444_s18 = sshll.u32 %s2123_s28, 2  ;;  %833 = vmatprep.subr.bf16.mxu1 %v1611_v9  ;;  %v1634_v29 = vld [vmem:[%s2117_s3 + $0x90] ss:$8 sps:$4 sm:$0xff]   ;;  %v1635_v30 = vld [vmem:[%s2117_s3 + $0xa4] ss:$8 sps:$4 sm:$0xff]   ;;  %v311_v63 = vsub.s32 1, %v1972_v60 }
   0xf   : > { %s1818_s21 = scalar_lea.vmem %s2114_s0, %s1444_s18  ;;  %v1637_v31 = vld [vmem:[%s2117_s3 + $0xa0] ss:$8 sps:$4 sm:$0xff]   ;;  %v1638_v32 = vld [vmem:[%s2117_s3 + $0xb4] ss:$8 sps:$4 sm:$0xff]   ;;  %v1640_v34 = vld [vmem:[%s2117_s3 + $0xb0] ss:$8 sps:$4 sm:$0xff]  }
  0x10   : > { %v1597_v10 = vld [vmem:[%s1818_s21] sm:$0xff]   ;;  %v1598_v12 = vld [vmem:[%s1818_s21 + $0x8] sm:$0xff]   ;;  %v1599_v18 = vld [vmem:[%s1818_s21 + $0x10] sm:$0xff]  }
  0x11   : > { %1459 = vmatmul.mubr.msk.bf16.vlgmr.msra.gmra.mrb[0].mxu0 %vm375_vm0, %v1597_v10  ;;  %834 = vmatpush1.bf16.msra.mxu1 %v1613_v11  ;;  %v1600_v23 = vld [vmem:[%s1818_s21 + $0x18] sm:$0xff]   ;;  %v1601_v28 = vld [vmem:[%s1818_s21 + $0x20] sm:$0xff]   ;;  %v1602_v33 = vld [vmem:[%s1818_s21 + $0x28] sm:$0xff]  }
  0x12   : > { %442 = vmatprep.mubr.bf16.mxu0 %v1741_v2  ;;  %835 = vmatprep.subr.bf16.mxu1 %v1614_v13  ;;  %v1641_v35 = vld [vmem:[%s2117_s3 + $0xc4] ss:$8 sps:$4 sm:$0xff]   ;;  %v1643_v36 = vld [vmem:[%s2117_s3 + $0xc0] ss:$8 sps:$4 sm:$0xff]   ;;  %v1603_v37 = vld [vmem:[%s1818_s21 + $0x30] sm:$0xff]  }
  0x13   : > { %v1604_v38 = vld [vmem:[%s1818_s21 + $0x38] sm:$0xff]   ;;  %v1647_v41 = vld [vmem:[%s2117_s3 + $0xe4] ss:$8 sps:$4 sm:$0xff]   ;;  %v1649_v42 = vld [vmem:[%s2117_s3 + $0xe0] ss:$8 sps:$4 sm:$0xff]   ;;  %s1446_s21 = sshll.u32 %s2123_s28, 3 }
  0x14   : > { %v1644_v39 = vld [vmem:[%s2117_s3 + $0xd4] ss:$8 sps:$4 sm:$0xff]   ;;  %v1646_v40 = vld [vmem:[%s2117_s3 + $0xd0] ss:$8 sps:$4 sm:$0xff]   ;;  %v1653_v45 = vld [vmem:[%s2119_s5 + $0x40] sm:$0xff]   ;;  %s2085_s17 = scalar_lea.vmem %s2121_s7, %s1446_s21 }
  0x15   : > { %836 = vmatpush1.bf16.msra.mxu1 %v1616_v14  ;;  %v1650_v43 = vld [vmem:[%s2117_s3 + $0xf4] ss:$8 sps:$4 sm:$0xff]   ;;  %v1652_v44 = vld [vmem:[%s2117_s3 + $0xf0] ss:$8 sps:$4 sm:$0xff]   ;;  %v1654_v46 = vld [vmem:[%s2119_s5] sm:$0xff]   ;;  %1518 = vmatprep.subr.bf16.mxu0 %v1653_v45 }
  0x16   : > { %837 = vmatprep.subr.bf16.mxu1 %v1617_v15  ;;  %v1655_v47 = vld [vmem:[%s2119_s5 + $0x48] sm:$0xff]   ;;  %1519 = vmatpush3.bf16.msra.mxu0 %v1654_v46  ;;  %v1657_v49 = vld [vmem:[%s2119_s5 + $0x50] sm:$0xff]   ;;  %v1659_v51 = vld [vmem:[%s2119_s5 + $0x58] sm:$0xff]  }
  0x17   : > { %v1656_v48 = vld [vmem:[%s2119_s5 + $0x8] sm:$0xff]   ;;  %1520 = vmatprep.subr.bf16.mxu0 %v1655_v47  ;;  %v1658_v50 = vld [vmem:[%s2119_s5 + $0x10] sm:$0xff]   ;;  %v1660_v52 = vld [vmem:[%s2119_s5 + $0x18] sm:$0xff]  }
  0x18   : > { %v1661_v53 = vld [vmem:[%s2119_s5 + $0x60] sm:$0xff]   ;;  %v1663_v55 = vld [vmem:[%s2119_s5 + $0x68] sm:$0xff]   ;;  %v1665_v57 = vld [vmem:[%s2119_s5 + $0x70] sm:$0xff]  }
  0x19   : > { %1460 = vmatmul.mubr.msk.bf16.gmra.mrb[4].mxu0 %vm375_vm0, %v1598_v12  ;;  %838 = vmatpush1.bf16.msra.mxu1 %v1619_v16  ;;  %v1662_v54 = vld [vmem:[%s2119_s5 + $0x20] sm:$0xff]   ;;  %v1664_v56 = vld [vmem:[%s2119_s5 + $0x28] sm:$0xff]   ;;  %v1666_v58 = vld [vmem:[%s2119_s5 + $0x30] sm:$0xff]  }
  0x1a   : > { %452 = vmatprep.mubr.bf16.mxu0 %v1741_v2  ;;  %839 = vmatprep.subr.bf16.mxu1 %v1620_v17  ;;  %v303_v62 = vld [vmem:[%s2116_s2] sm:$0x3] }
  0x1b   : > { %1521 = vmatpush3.bf16.msra.mxu0 %v1656_v48  ;;  %v1981_v0 = vrot.slane %v303_v62, %v307_v61  ;;  %v1985_v1 = vrot.slane %v303_v62, %v311_v63 }
  0x1c   : > { %1522 = vmatprep.subr.bf16.mxu0 %v1657_v49 }
  0x1d   : > { %840 = vmatpush1.bf16.msra.mxu1 %v1622_v19 }
  0x1e   : > { %841 = vmatprep.subr.bf16.mxu1 %v1623_v20 }
  0x1f   : > { %1523 = vmatpush3.bf16.msra.mxu0 %v1658_v50 }
  0x20   : > { %1524 = vmatprep.subr.bf16.mxu0 %v1659_v51 }
  0x21   : > { %1461 = vmatmul.mubr.msk.bf16.gmra.mrb[8].mxu0 %vm375_vm0, %v1599_v18  ;;  %842 = vmatpush1.bf16.msra.mxu1 %v1625_v21 }
  0x22   : > { %462 = vmatprep.mubr.bf16.mxu0 %v1741_v2  ;;  %843 = vmatprep.subr.bf16.mxu1 %v1626_v22 }
  0x23   : > { %1525 = vmatpush3.bf16.msra.mxu0 %v1660_v52 }
  0x24   : > { %1526 = vmatprep.subr.bf16.mxu0 %v1661_v53 }
  0x25   : > { %844 = vmatpush1.bf16.msra.mxu1 %v1628_v24 }
  0x26   : > { %845 = vmatprep.subr.bf16.mxu1 %v1629_v25 }
  0x27   : > { %1527 = vmatpush3.bf16.msra.mxu0 %v1662_v54 }
  0x28   : > { %1528 = vmatprep.subr.bf16.mxu0 %v1663_v55 }
  0x29   : > { %1462 = vmatmul.mubr.msk.bf16.gmra.mrb[12].mxu0 %vm375_vm0, %v1600_v23  ;;  %846 = vmatpush1.bf16.msra.mxu1 %v1631_v26 }
  0x2a   : > { %472 = vmatprep.mubr.bf16.mxu0 %v1741_v2  ;;  %847 = vmatprep.subr.bf16.mxu1 %v1632_v27 }
  0x2b   : > { %1529 = vmatpush3.bf16.msra.mxu0 %v1664_v56 }
  0x2c   : > { %1530 = vmatprep.subr.bf16.mxu0 %v1665_v57 }
  0x2d   : > { %848 = vmatpush1.bf16.msra.mxu1 %v1634_v29 }
  0x2e   : > { %849 = vmatprep.subr.bf16.mxu1 %v1635_v30 }
  0x2f   : > { %1531 = vmatpush3.bf16.msra.mxu0 %v1666_v58 }
  0x31   : > { %1463 = vmatmul.mubr.msk.bf16.gmra.mrb[16].mxu0 %vm375_vm0, %v1601_v28  ;;  %850 = vmatpush1.bf16.msra.mxu1 %v1637_v31 }
  0x32   : > { %482 = vmatprep.mubr.bf16.mxu0 %v1741_v2  ;;  %851 = vmatprep.subr.bf16.mxu1 %v1638_v32 }
  0x35   : > { %852 = vmatpush1.bf16.msra.mxu1 %v1640_v34 }
  0x36   : > { %853 = vmatprep.subr.bf16.mxu1 %v1641_v35 }
  0x39   : > { %1464 = vmatmul.mubr.msk.bf16.gmra.mrb[20].mxu0 %vm375_vm0, %v1602_v33  ;;  %854 = vmatpush1.bf16.msra.mxu1 %v1643_v36 }
  0x3a   : > { %492 = vmatprep.mubr.bf16.mxu0 %v1741_v2  ;;  %855 = vmatprep.subr.bf16.mxu1 %v1644_v39 }
  0x3d   : > { %856 = vmatpush1.bf16.msra.mxu1 %v1646_v40 }
  0x3e   : > { %857 = vmatprep.subr.bf16.mxu1 %v1647_v41 }
  0x41   : > { %1465 = vmatmul.mubr.msk.bf16.gmra.mrb[24].mxu0 %vm375_vm0, %v1603_v37  ;;  %858 = vmatpush1.bf16.msra.mxu1 %v1649_v42 }
  0x42   : > { %502 = vmatprep.mubr.bf16.mxu0 %v1741_v2  ;;  %859 = vmatprep.subr.bf16.mxu1 %v1650_v43 }
  0x45   : > { %860 = vmatpush1.bf16.msra.mxu1 %v1652_v44 }
  0x49   : > { %1466 = vmatmul.mubr.msk.bf16.gmra.mrb[28].mxu0 %vm375_vm0, %v1604_v38 }
  0xe4   : > { %v434_v2 = vpop.f32.mrb[0].mxu0 }
  0xe5   : > { %v435_v3 = vadd.f32 %v434_v2, %v1981_v0  ;;  %v436_v4 = vpop.f32.mrb[1].mxu0 }
  0xe6   : > { %v437_v5 = vadd.f32 %v436_v4, %v1985_v1  ;;  %v438_v6 = vpop.f32.mrb[2].mxu0 }
  0xe7   : > { %v545_v7 = vmul.f32 0.2, %v435_v3  ;;  %v439_v8 = vadd.f32 %v438_v6, %v1981_v0  ;;  %v440_v9 = vpop.f32.mrb[3].mxu0  ;;  %vm513_vm1 = vcmp.gt.f32.partialorder %v435_v3, 0.0 }
  0xe8   : > { %v546_v10 = vmul.f32 0.2, %v437_v5  ;;  %v441_v11 = vadd.f32 %v440_v9, %v1985_v1  ;;  %vm514_vm3 = vcmp.gt.f32.partialorder %v437_v5, 0.0 }
  0xe9   : > { %vm515_vm2 = vcmp.gt.f32.partialorder %v439_v8, 0.0  ;;  %v547_v12 = vmul.f32 0.2, %v439_v8  ;;  %v577_v14 = vsel %vm513_vm1, %v435_v3, %v545_v7 }
  0xea   : > { %v548_v13 = vmul.f32 0.2, %v441_v11  ;;  %vm516_vm4 = vcmp.gt.f32.partialorder %v441_v11, 0.0  ;;  %v578_v17 = vsel %vm514_vm3, %v437_v5, %v546_v10 }
  0xeb   : > { %v579_v15 = vsel %vm515_vm2, %v439_v8, %v547_v12 }
  0xec   : > { %v444_v16 = vpop.f32.mrb[4].mxu0  ;;  %v580_v18 = vsel %vm516_vm4, %v441_v11, %v548_v13  ;;  %v609_v19 = vpack.c.bf16 %v579_v15, %v577_v14 }
  0xed   : > { %v445_v20 = vadd.f32 %v444_v16, %v1981_v0  ;;  %v446_v21 = vpop.f32.mrb[5].mxu0  ;;  %v610_v22 = vpack.c.bf16 %v580_v18, %v578_v17 }
  0xee   : > { %v447_v23 = vadd.f32 %v446_v21, %v1985_v1  ;;  %v448_v24 = vpop.f32.mrb[6].mxu0 }
  0xef   : > { %v549_v25 = vmul.f32 0.2, %v445_v20  ;;  %v449_v26 = vadd.f32 %v448_v24, %v1981_v0  ;;  %v450_v27 = vpop.f32.mrb[7].mxu0  ;;  %861 = vmatprep.mubr.bf16.mxu1 %v610_v22  ;;  %vm517_vm5 = vcmp.gt.f32.partialorder %v445_v20, 0.0 }
  0xf0   : > { %v550_v28 = vmul.f32 0.2, %v447_v23  ;;  %v451_v29 = vadd.f32 %v450_v27, %v1985_v1  ;;  %862 = vmatmul.mubr.bf16.vlgmr.msra.gmra.mrb[0].mxu1 %v609_v19  ;;  %vm518_vm6 = vcmp.gt.f32.partialorder %v447_v23, 0.0 }
  0xf1   : > { %vm519_vm7 = vcmp.gt.f32.partialorder %v449_v26, 0.0  ;;  %v551_v30 = vmul.f32 0.2, %v449_v26  ;;  %v581_v32 = vsel %vm517_vm5, %v445_v20, %v549_v25 }
  0xf2   : > { %vm520_vm8 = vcmp.gt.f32.partialorder %v451_v29, 0.0  ;;  %v552_v31 = vmul.f32 0.2, %v451_v29  ;;  %v582_v35 = vsel %vm518_vm6, %v447_v23, %v550_v28 }
  0xf3   : > { %v583_v33 = vsel %vm519_vm7, %v449_v26, %v551_v30 }
  0xf4   : > { %v454_v34 = vpop.f32.mrb[8].mxu0  ;;  %v584_v36 = vsel %vm520_vm8, %v451_v29, %v552_v31  ;;  %v611_v37 = vpack.c.bf16 %v583_v33, %v581_v32 }
  0xf5   : > { %v455_v38 = vadd.f32 %v454_v34, %v1981_v0  ;;  %v456_v39 = vpop.f32.mrb[9].mxu0  ;;  %v612_v40 = vpack.c.bf16 %v584_v36, %v582_v35 }
  0xf6   : > { %v457_v41 = vadd.f32 %v456_v39, %v1985_v1  ;;  %v458_v42 = vpop.f32.mrb[10].mxu0 }
  0xf7   : > { %v553_v43 = vmul.f32 0.2, %v455_v38  ;;  %v459_v44 = vadd.f32 %v458_v42, %v1981_v0  ;;  %v460_v45 = vpop.f32.mrb[11].mxu0  ;;  %871 = vmatprep.mubr.bf16.mxu1 %v612_v40  ;;  %vm521_vm9 = vcmp.gt.f32.partialorder %v455_v38, 0.0 }
  0xf8   : > { %v554_v46 = vmul.f32 0.2, %v457_v41  ;;  %v461_v47 = vadd.f32 %v460_v45, %v1985_v1  ;;  %872 = vmatmul.mubr.bf16.gmra.mrb[4].mxu1 %v611_v37  ;;  %vm522_vm10 = vcmp.gt.f32.partialorder %v457_v41, 0.0 }
  0xf9   : > { %vm523_vm11 = vcmp.gt.f32.partialorder %v459_v44, 0.0  ;;  %v555_v48 = vmul.f32 0.2, %v459_v44  ;;  %v585_v50 = vsel %vm521_vm9, %v455_v38, %v553_v43 }
  0xfa   : > { %vm524_vm12 = vcmp.gt.f32.partialorder %v461_v47, 0.0  ;;  %v556_v49 = vmul.f32 0.2, %v461_v47  ;;  %v586_v53 = vsel %vm522_vm10, %v457_v41, %v554_v46 }
  0xfb   : > { %v587_v51 = vsel %vm523_vm11, %v459_v44, %v555_v48 }
  0xfc   : > { %v464_v52 = vpop.f32.mrb[12].mxu0  ;;  %v588_v54 = vsel %vm524_vm12, %v461_v47, %v556_v49  ;;  %v613_v55 = vpack.c.bf16 %v587_v51, %v585_v50 }
  0xfd   : > { %v465_v56 = vadd.f32 %v464_v52, %v1981_v0  ;;  %v466_v57 = vpop.f32.mrb[13].mxu0  ;;  %v614_v58 = vpack.c.bf16 %v588_v54, %v586_v53 }
  0xfe   : > { %v467_v59 = vadd.f32 %v466_v57, %v1985_v1  ;;  %v468_v62 = vpop.f32.mrb[14].mxu0 }
  0xff   : > { %v557_v2 = vmul.f32 0.2, %v465_v56  ;;  %v469_v3 = vadd.f32 %v468_v62, %v1981_v0  ;;  %v470_v4 = vpop.f32.mrb[15].mxu0  ;;  %881 = vmatprep.mubr.bf16.mxu1 %v614_v58  ;;  %vm525_vm13 = vcmp.gt.f32.partialorder %v465_v56, 0.0 }
 0x100   : > { %v558_v5 = vmul.f32 0.2, %v467_v59  ;;  %v471_v6 = vadd.f32 %v470_v4, %v1985_v1  ;;  %882 = vmatmul.mubr.bf16.gmra.mrb[8].mxu1 %v613_v55  ;;  %vm526_vm14 = vcmp.gt.f32.partialorder %v467_v59, 0.0 }
 0x101   : > { %vm527_vm15 = vcmp.gt.f32.partialorder %v469_v3, 0.0  ;;  %v559_v7 = vmul.f32 0.2, %v469_v3  ;;  %v589_v9 = vsel %vm525_vm13, %v465_v56, %v557_v2 }
 0x102   : > { %vm528_vm0 = vcmp.gt.f32.partialorder %v471_v6, 0.0  ;;  %v560_v8 = vmul.f32 0.2, %v471_v6  ;;  %v590_v12 = vsel %vm526_vm14, %v467_v59, %v558_v5 }
 0x103   : > { %v591_v10 = vsel %vm527_vm15, %v469_v3, %v559_v7 }
 0x104   : > { %v474_v11 = vpop.f32.mrb[16].mxu0  ;;  %v592_v13 = vsel %vm528_vm0, %v471_v6, %v560_v8  ;;  %v615_v14 = vpack.c.bf16 %v591_v10, %v589_v9 }
 0x105   : > { %v475_v15 = vadd.f32 %v474_v11, %v1981_v0  ;;  %v476_v16 = vpop.f32.mrb[17].mxu0  ;;  %v616_v17 = vpack.c.bf16 %v592_v13, %v590_v12 }
 0x106   : > { %v477_v18 = vadd.f32 %v476_v16, %v1985_v1  ;;  %v478_v19 = vpop.f32.mrb[18].mxu0 }
 0x107   : > { %v561_v20 = vmul.f32 0.2, %v475_v15  ;;  %v479_v21 = vadd.f32 %v478_v19, %v1981_v0  ;;  %v480_v22 = vpop.f32.mrb[19].mxu0  ;;  %891 = vmatprep.mubr.bf16.mxu1 %v616_v17  ;;  %vm529_vm1 = vcmp.gt.f32.partialorder %v475_v15, 0.0 }
 0x108   : > { %v562_v23 = vmul.f32 0.2, %v477_v18  ;;  %v481_v24 = vadd.f32 %v480_v22, %v1985_v1  ;;  %892 = vmatmul.mubr.bf16.gmra.mrb[12].mxu1 %v615_v14  ;;  %vm530_vm2 = vcmp.gt.f32.partialorder %v477_v18, 0.0 }
 0x109   : > { %vm531_vm3 = vcmp.gt.f32.partialorder %v479_v21, 0.0  ;;  %v563_v25 = vmul.f32 0.2, %v479_v21  ;;  %v593_v27 = vsel %vm529_vm1, %v475_v15, %v561_v20 }
 0x10a   : > { %vm532_vm4 = vcmp.gt.f32.partialorder %v481_v24, 0.0  ;;  %v564_v26 = vmul.f32 0.2, %v481_v24  ;;  %v594_v30 = vsel %vm530_vm2, %v477_v18, %v562_v23 }
 0x10b   : > { %v595_v28 = vsel %vm531_vm3, %v479_v21, %v563_v25 }
 0x10c   : > { %v484_v29 = vpop.f32.mrb[20].mxu0  ;;  %v596_v31 = vsel %vm532_vm4, %v481_v24, %v564_v26  ;;  %v617_v32 = vpack.c.bf16 %v595_v28, %v593_v27  ;;  %v657_v28 = vld [vmem:[%s2118_s4] sm:$0x3] }
 0x10d   : > { %v485_v33 = vadd.f32 %v484_v29, %v1981_v0  ;;  %v486_v34 = vpop.f32.mrb[21].mxu0  ;;  %v618_v35 = vpack.c.bf16 %v596_v31, %v594_v30  ;;  %v2030_v29 = vrot.slane %v657_v28, %v307_v61  ;;  %v2034_v30 = vrot.slane %v657_v28, %v311_v63 }
 0x10e   : > { %v487_v36 = vadd.f32 %v486_v34, %v1985_v1  ;;  %v488_v37 = vpop.f32.mrb[22].mxu0 }
 0x10f   : > { %v565_v38 = vmul.f32 0.2, %v485_v33  ;;  %v489_v39 = vadd.f32 %v488_v37, %v1981_v0  ;;  %v490_v40 = vpop.f32.mrb[23].mxu0  ;;  %901 = vmatprep.mubr.bf16.mxu1 %v618_v35  ;;  %vm533_vm5 = vcmp.gt.f32.partialorder %v485_v33, 0.0 }
 0x110   : > { %v566_v41 = vmul.f32 0.2, %v487_v36  ;;  %v491_v42 = vadd.f32 %v490_v40, %v1985_v1  ;;  %902 = vmatmul.mubr.bf16.gmra.mrb[16].mxu1 %v617_v32  ;;  %vm534_vm6 = vcmp.gt.f32.partialorder %v487_v36, 0.0 }
 0x111   : > { %vm535_vm7 = vcmp.gt.f32.partialorder %v489_v39, 0.0  ;;  %v567_v43 = vmul.f32 0.2, %v489_v39  ;;  %v597_v45 = vsel %vm533_vm5, %v485_v33, %v565_v38 }
 0x112   : > { %vm536_vm8 = vcmp.gt.f32.partialorder %v491_v42, 0.0  ;;  %v568_v44 = vmul.f32 0.2, %v491_v42  ;;  %v598_v48 = vsel %vm534_vm6, %v487_v36, %v566_v41 }
 0x113   : > { %v599_v46 = vsel %vm535_vm7, %v489_v39, %v567_v43 }
 0x114   : > { %v494_v47 = vpop.f32.mrb[24].mxu0  ;;  %v600_v49 = vsel %vm536_vm8, %v491_v42, %v568_v44  ;;  %v619_v50 = vpack.c.bf16 %v599_v46, %v597_v45 }
 0x115   : > { %v495_v51 = vadd.f32 %v494_v47, %v1981_v0  ;;  %v496_v52 = vpop.f32.mrb[25].mxu0  ;;  %v620_v53 = vpack.c.bf16 %v600_v49, %v598_v48 }
 0x116   : > { %v497_v54 = vadd.f32 %v496_v52, %v1985_v1  ;;  %v498_v55 = vpop.f32.mrb[26].mxu0 }
 0x117   : > { %v569_v56 = vmul.f32 0.2, %v495_v51  ;;  %v499_v57 = vadd.f32 %v498_v55, %v1981_v0  ;;  %v500_v58 = vpop.f32.mrb[27].mxu0  ;;  %911 = vmatprep.mubr.bf16.mxu1 %v620_v53  ;;  %vm537_vm9 = vcmp.gt.f32.partialorder %v495_v51, 0.0 }
 0x118   : > { %v570_v59 = vmul.f32 0.2, %v497_v54  ;;  %v501_v62 = vadd.f32 %v500_v58, %v1985_v1  ;;  %912 = vmatmul.mubr.bf16.gmra.mrb[20].mxu1 %v619_v50  ;;  %vm538_vm10 = vcmp.gt.f32.partialorder %v497_v54, 0.0 }
 0x119   : > { %vm539_vm11 = vcmp.gt.f32.partialorder %v499_v57, 0.0  ;;  %v571_v2 = vmul.f32 0.2, %v499_v57  ;;  %v601_v4 = vsel %vm537_vm9, %v495_v51, %v569_v56 }
 0x11a   : > { %vm540_vm12 = vcmp.gt.f32.partialorder %v501_v62, 0.0  ;;  %v572_v3 = vmul.f32 0.2, %v501_v62  ;;  %v602_v7 = vsel %vm538_vm10, %v497_v54, %v570_v59 }
 0x11b   : > { %v603_v5 = vsel %vm539_vm11, %v499_v57, %v571_v2 }
 0x11c   : > { %v504_v6 = vpop.f32.mrb[28].mxu0  ;;  %v604_v8 = vsel %vm540_vm12, %v501_v62, %v572_v3  ;;  %v621_v9 = vpack.c.bf16 %v603_v5, %v601_v4 }
 0x11d   : > { %v505_v10 = vadd.f32 %v504_v6, %v1981_v0  ;;  %v506_v11 = vpop.f32.mrb[29].mxu0  ;;  %v622_v12 = vpack.c.bf16 %v604_v8, %v602_v7 }
 0x11e   : > { %v507_v13 = vadd.f32 %v506_v11, %v1985_v1  ;;  %v508_v14 = vpop.f32.mrb[30].mxu0 }
 0x11f   : > { %v573_v15 = vmul.f32 0.2, %v505_v10  ;;  %v509_v16 = vadd.f32 %v508_v14, %v1981_v0  ;;  %v510_v17 = vpop.f32.mrb[31].mxu0  ;;  %921 = vmatprep.mubr.bf16.mxu1 %v622_v12  ;;  %vm541_vm13 = vcmp.gt.f32.partialorder %v505_v10, 0.0  ;;  %v1667_v0 = vld [vmem:[%s2119_s5 + $0x78] sm:$0xff]  }
 0x120   : > { %v574_v18 = vmul.f32 0.2, %v507_v13  ;;  %v511_v19 = vadd.f32 %v510_v17, %v1985_v1  ;;  %922 = vmatmul.mubr.bf16.gmra.mrb[24].mxu1 %v621_v9  ;;  %vm542_vm14 = vcmp.gt.f32.partialorder %v507_v13, 0.0  ;;  %v1668_v1 = vld [vmem:[%s2119_s5 + $0x38] sm:$0xff]   ;;  %1532 = vmatprep.subr.bf16.mxu0 %v1667_v0 }
 0x121   : > { %vm543_vm15 = vcmp.gt.f32.partialorder %v509_v16, 0.0  ;;  %v575_v20 = vmul.f32 0.2, %v509_v16  ;;  %v605_v22 = vsel %vm541_vm13, %v505_v10, %v573_v15  ;;  %1533 = vmatpush3.bf16.msra.mxu0 %v1668_v1 }
 0x122   : > { %vm544_vm0 = vcmp.gt.f32.partialorder %v511_v19, 0.0  ;;  %v576_v21 = vmul.f32 0.2, %v511_v19  ;;  %v606_v24 = vsel %vm542_vm14, %v507_v13, %v574_v18 }
 0x123   : > { %v607_v23 = vsel %vm543_vm15, %v509_v16, %v575_v20 }
 0x124   : > { %v608_v25 = vsel %vm544_vm0, %v511_v19, %v576_v21  ;;  %v623_v26 = vpack.c.bf16 %v607_v23, %v605_v22 }
 0x125   : > { %v624_v27 = vpack.c.bf16 %v608_v25, %v606_v24 }
 0x127   : > { %931 = vmatprep.mubr.bf16.mxu1 %v624_v27 }
 0x128   : > { %932 = vmatmul.mubr.bf16.gmra.mrb[28].mxu1 %v623_v26 }
 0x1c3   : > { %v863_v31 = vpop.f32.mrb[0].mxu1 }
 0x1c4   : > { %v864_v32 = vadd.f32 %v863_v31, %v2030_v29  ;;  %v865_v33 = vpop.f32.mrb[1].mxu1 }
 0x1c5   : > { %v866_v34 = vadd.f32 %v865_v33, %v2034_v30  ;;  %v867_v35 = vpop.f32.mrb[2].mxu1 }
 0x1c6   : > { %v974_v36 = vmul.f32 0.2, %v864_v32  ;;  %v868_v37 = vadd.f32 %v867_v35, %v2030_v29  ;;  %v869_v38 = vpop.f32.mrb[3].mxu1  ;;  %vm942_vm1 = vcmp.gt.f32.partialorder %v864_v32, 0.0 }
 0x1c7   : > { %v975_v39 = vmul.f32 0.2, %v866_v34  ;;  %v870_v61 = vadd.f32 %v869_v38, %v2034_v30  ;;  %vm943_vm2 = vcmp.gt.f32.partialorder %v866_v34, 0.0 }
 0x1c8   : > { %vm944_vm3 = vcmp.gt.f32.partialorder %v868_v37, 0.0  ;;  %v976_v60 = vmul.f32 0.2, %v868_v37  ;;  %v1006_v40 = vsel %vm942_vm1, %v864_v32, %v974_v36 }
 0x1c9   : > { %vm945_vm4 = vcmp.gt.f32.partialorder %v870_v61, 0.0  ;;  %v977_v63 = vmul.f32 0.2, %v870_v61  ;;  %v1007_v44 = vsel %vm943_vm2, %v866_v34, %v975_v39 }
 0x1ca   : > { %v1008_v41 = vsel %vm944_vm3, %v868_v37, %v976_v60 }
 0x1cb   : > { %v1038_v42 = vpack.c.bf16 %v1008_v41, %v1006_v40  ;;  %v873_v43 = vpop.f32.mrb[4].mxu1  ;;  %v1009_v45 = vsel %vm945_vm4, %v870_v61, %v977_v63 }
 0x1cc   : > { %v874_v46 = vadd.f32 %v873_v43, %v2030_v29  ;;  %v875_v47 = vpop.f32.mrb[5].mxu1  ;;  %v1039_v48 = vpack.c.bf16 %v1009_v45, %v1007_v44 }
 0x1cd   : > { %v876_v49 = vadd.f32 %v875_v47, %v2034_v30  ;;  %v877_v50 = vpop.f32.mrb[6].mxu1 }
 0x1ce   : > { %v978_v51 = vmul.f32 0.2, %v874_v46  ;;  %v878_v52 = vadd.f32 %v877_v50, %v2030_v29  ;;  %v879_v53 = vpop.f32.mrb[7].mxu1  ;;  %1221 = vmatprep.mubr.bf16.mxu0 %v1039_v48  ;;  %vm946_vm5 = vcmp.gt.f32.partialorder %v874_v46, 0.0 }
 0x1cf   : > { %v979_v54 = vmul.f32 0.2, %v876_v49  ;;  %v880_v55 = vadd.f32 %v879_v53, %v2034_v30  ;;  %1222 = vmatmul.mubr.bf16.vlgmr.msra.gmra.mrb[32].mxu0 %v1038_v42  ;;  %vm947_vm6 = vcmp.gt.f32.partialorder %v876_v49, 0.0 }
 0x1d0   : > { %vm948_vm7 = vcmp.gt.f32.partialorder %v878_v52, 0.0  ;;  %v980_v56 = vmul.f32 0.2, %v878_v52  ;;  %v1010_v58 = vsel %vm946_vm5, %v874_v46, %v978_v51 }
 0x1d1   : > { %vm949_vm8 = vcmp.gt.f32.partialorder %v880_v55, 0.0  ;;  %v981_v57 = vmul.f32 0.2, %v880_v55  ;;  %v1011_v2 = vsel %vm947_vm6, %v876_v49, %v979_v54 }
 0x1d2   : > { %v1012_v59 = vsel %vm948_vm7, %v878_v52, %v980_v56 }
 0x1d3   : > { %v883_v62 = vpop.f32.mrb[8].mxu1  ;;  %v1013_v3 = vsel %vm949_vm8, %v880_v55, %v981_v57  ;;  %v1040_v4 = vpack.c.bf16 %v1012_v59, %v1010_v58 }
 0x1d4   : > { %v884_v5 = vadd.f32 %v883_v62, %v2030_v29  ;;  %v885_v6 = vpop.f32.mrb[9].mxu1  ;;  %v1041_v7 = vpack.c.bf16 %v1013_v3, %v1011_v2 }
 0x1d5   : > { %v886_v8 = vadd.f32 %v885_v6, %v2034_v30  ;;  %v887_v9 = vpop.f32.mrb[10].mxu1 }
 0x1d6   : > { %v982_v10 = vmul.f32 0.2, %v884_v5  ;;  %v888_v11 = vadd.f32 %v887_v9, %v2030_v29  ;;  %v889_v12 = vpop.f32.mrb[11].mxu1  ;;  %1229 = vmatprep.mubr.bf16.mxu0 %v1041_v7  ;;  %vm950_vm9 = vcmp.gt.f32.partialorder %v884_v5, 0.0 }
 0x1d7   : > { %v983_v13 = vmul.f32 0.2, %v886_v8  ;;  %v890_v14 = vadd.f32 %v889_v12, %v2034_v30  ;;  %1230 = vmatmul.mubr.bf16.gmra.mrb[36].mxu0 %v1040_v4  ;;  %vm951_vm10 = vcmp.gt.f32.partialorder %v886_v8, 0.0 }
 0x1d8   : > { %vm952_vm11 = vcmp.gt.f32.partialorder %v888_v11, 0.0  ;;  %v984_v15 = vmul.f32 0.2, %v888_v11  ;;  %v1014_v17 = vsel %vm950_vm9, %v884_v5, %v982_v10 }
 0x1d9   : > { %vm953_vm12 = vcmp.gt.f32.partialorder %v890_v14, 0.0  ;;  %v985_v16 = vmul.f32 0.2, %v890_v14  ;;  %v1015_v20 = vsel %vm951_vm10, %v886_v8, %v983_v13 }
 0x1da   : > { %v1016_v18 = vsel %vm952_vm11, %v888_v11, %v984_v15 }
 0x1db   : > { %v893_v19 = vpop.f32.mrb[12].mxu1  ;;  %v1017_v21 = vsel %vm953_vm12, %v890_v14, %v985_v16  ;;  %v1042_v22 = vpack.c.bf16 %v1016_v18, %v1014_v17 }
 0x1dc   : > { %v894_v23 = vadd.f32 %v893_v19, %v2030_v29  ;;  %v895_v24 = vpop.f32.mrb[13].mxu1  ;;  %v1043_v25 = vpack.c.bf16 %v1017_v21, %v1015_v20 }
 0x1dd   : > { %v896_v26 = vadd.f32 %v895_v24, %v2034_v30  ;;  %v897_v27 = vpop.f32.mrb[14].mxu1 }
 0x1de   : > { %v986_v0 = vmul.f32 0.2, %v894_v23  ;;  %v898_v1 = vadd.f32 %v897_v27, %v2030_v29  ;;  %v899_v28 = vpop.f32.mrb[15].mxu1  ;;  %1237 = vmatprep.mubr.bf16.mxu0 %v1043_v25  ;;  %vm954_vm13 = vcmp.gt.f32.partialorder %v894_v23, 0.0 }
 0x1df   : > { %v987_v31 = vmul.f32 0.2, %v896_v26  ;;  %v900_v32 = vadd.f32 %v899_v28, %v2034_v30  ;;  %1238 = vmatmul.mubr.bf16.gmra.mrb[40].mxu0 %v1042_v22  ;;  %vm955_vm14 = vcmp.gt.f32.partialorder %v896_v26, 0.0 }
 0x1e0   : > { %vm956_vm15 = vcmp.gt.f32.partialorder %v898_v1, 0.0  ;;  %v988_v33 = vmul.f32 0.2, %v898_v1  ;;  %v1018_v35 = vsel %vm954_vm13, %v894_v23, %v986_v0 }
 0x1e1   : > { %vm957_vm0 = vcmp.gt.f32.partialorder %v900_v32, 0.0  ;;  %v989_v34 = vmul.f32 0.2, %v900_v32  ;;  %v1019_v38 = vsel %vm955_vm14, %v896_v26, %v987_v31 }
 0x1e2   : > { %v1020_v36 = vsel %vm956_vm15, %v898_v1, %v988_v33 }
 0x1e3   : > { %v903_v37 = vpop.f32.mrb[16].mxu1  ;;  %v1021_v39 = vsel %vm957_vm0, %v900_v32, %v989_v34  ;;  %v1044_v61 = vpack.c.bf16 %v1020_v36, %v1018_v35 }
 0x1e4   : > { %v904_v60 = vadd.f32 %v903_v37, %v2030_v29  ;;  %v905_v63 = vpop.f32.mrb[17].mxu1  ;;  %v1045_v40 = vpack.c.bf16 %v1021_v39, %v1019_v38 }
 0x1e5   : > { %v906_v41 = vadd.f32 %v905_v63, %v2034_v30  ;;  %v907_v42 = vpop.f32.mrb[18].mxu1 }
 0x1e6   : > { %v990_v43 = vmul.f32 0.2, %v904_v60  ;;  %v908_v44 = vadd.f32 %v907_v42, %v2030_v29  ;;  %v909_v45 = vpop.f32.mrb[19].mxu1  ;;  %1245 = vmatprep.mubr.bf16.mxu0 %v1045_v40  ;;  %vm958_vm1 = vcmp.gt.f32.partialorder %v904_v60, 0.0 }
 0x1e7   : > { %v991_v46 = vmul.f32 0.2, %v906_v41  ;;  %v910_v47 = vadd.f32 %v909_v45, %v2034_v30  ;;  %1246 = vmatmul.mubr.bf16.gmra.mrb[44].mxu0 %v1044_v61  ;;  %vm959_vm2 = vcmp.gt.f32.partialorder %v906_v41, 0.0 }
 0x1e8   : > { %vm960_vm3 = vcmp.gt.f32.partialorder %v908_v44, 0.0  ;;  %v992_v48 = vmul.f32 0.2, %v908_v44  ;;  %v1022_v50 = vsel %vm958_vm1, %v904_v60, %v990_v43 }
 0x1e9   : > { %vm961_vm4 = vcmp.gt.f32.partialorder %v910_v47, 0.0  ;;  %v993_v49 = vmul.f32 0.2, %v910_v47  ;;  %v1023_v53 = vsel %vm959_vm2, %v906_v41, %v991_v46 }
 0x1ea   : > { %v1024_v51 = vsel %vm960_vm3, %v908_v44, %v992_v48  ;;  %v2071_v48 = vld [vmem:[%s2120_s6] ss:$0 sm:$0xff] }
 0x1eb   : > { %v913_v52 = vpop.f32.mrb[20].mxu1  ;;  %v1025_v54 = vsel %vm961_vm4, %v910_v47, %v993_v49  ;;  %v1046_v55 = vpack.c.bf16 %v1024_v51, %v1022_v50 }
 0x1ec   : > { %v914_v56 = vadd.f32 %v913_v52, %v2030_v29  ;;  %v915_v57 = vpop.f32.mrb[21].mxu1  ;;  %v1047_v58 = vpack.c.bf16 %v1025_v54, %v1023_v53 }
 0x1ed   : > { %v916_v59 = vadd.f32 %v915_v57, %v2034_v30  ;;  %v917_v62 = vpop.f32.mrb[22].mxu1 }
 0x1ee   : > { %v994_v2 = vmul.f32 0.2, %v914_v56  ;;  %v918_v3 = vadd.f32 %v917_v62, %v2030_v29  ;;  %v919_v4 = vpop.f32.mrb[23].mxu1  ;;  %1253 = vmatprep.mubr.bf16.mxu0 %v1047_v58  ;;  %vm962_vm5 = vcmp.gt.f32.partialorder %v914_v56, 0.0 }
 0x1ef   : > { %v995_v5 = vmul.f32 0.2, %v916_v59  ;;  %v920_v6 = vadd.f32 %v919_v4, %v2034_v30  ;;  %1254 = vmatmul.mubr.bf16.gmra.mrb[48].mxu0 %v1046_v55  ;;  %vm963_vm6 = vcmp.gt.f32.partialorder %v916_v59, 0.0 }
 0x1f0   : > { %vm964_vm7 = vcmp.gt.f32.partialorder %v918_v3, 0.0  ;;  %v996_v7 = vmul.f32 0.2, %v918_v3  ;;  %v1026_v9 = vsel %vm962_vm5, %v914_v56, %v994_v2 }
 0x1f1   : > { %vm965_vm8 = vcmp.gt.f32.partialorder %v920_v6, 0.0  ;;  %v997_v8 = vmul.f32 0.2, %v920_v6  ;;  %v1027_v12 = vsel %vm963_vm6, %v916_v59, %v995_v5 }
 0x1f2   : > { %v1028_v10 = vsel %vm964_vm7, %v918_v3, %v996_v7 }
 0x1f3   : > { %v923_v11 = vpop.f32.mrb[24].mxu1  ;;  %v1029_v13 = vsel %vm965_vm8, %v920_v6, %v997_v8  ;;  %v1048_v14 = vpack.c.bf16 %v1028_v10, %v1026_v9 }
 0x1f4   : > { %v924_v15 = vadd.f32 %v923_v11, %v2030_v29  ;;  %v925_v16 = vpop.f32.mrb[25].mxu1  ;;  %v1049_v17 = vpack.c.bf16 %v1029_v13, %v1027_v12 }
 0x1f5   : > { %v926_v18 = vadd.f32 %v925_v16, %v2034_v30  ;;  %v927_v19 = vpop.f32.mrb[26].mxu1 }
 0x1f6   : > { %v998_v20 = vmul.f32 0.2, %v924_v15  ;;  %v928_v21 = vadd.f32 %v927_v19, %v2030_v29  ;;  %v929_v22 = vpop.f32.mrb[27].mxu1  ;;  %1261 = vmatprep.mubr.bf16.mxu0 %v1049_v17  ;;  %vm966_vm9 = vcmp.gt.f32.partialorder %v924_v15, 0.0 }
 0x1f7   : > { %v999_v23 = vmul.f32 0.2, %v926_v18  ;;  %v930_v24 = vadd.f32 %v929_v22, %v2034_v30  ;;  %1262 = vmatmul.mubr.bf16.gmra.mrb[52].mxu0 %v1048_v14  ;;  %vm967_vm10 = vcmp.gt.f32.partialorder %v926_v18, 0.0 }
 0x1f8   : > { %vm968_vm11 = vcmp.gt.f32.partialorder %v928_v21, 0.0  ;;  %v1000_v25 = vmul.f32 0.2, %v928_v21  ;;  %v1030_v27 = vsel %vm966_vm9, %v924_v15, %v998_v20 }
 0x1f9   : > { %vm969_vm12 = vcmp.gt.f32.partialorder %v930_v24, 0.0  ;;  %v1001_v26 = vmul.f32 0.2, %v930_v24  ;;  %v1031_v28 = vsel %vm967_vm10, %v926_v18, %v999_v23 }
 0x1fa   : > { %v1032_v0 = vsel %vm968_vm11, %v928_v21, %v1000_v25 }
 0x1fb   : > { %v933_v1 = vpop.f32.mrb[28].mxu1  ;;  %v1033_v31 = vsel %vm969_vm12, %v930_v24, %v1001_v26  ;;  %v1050_v32 = vpack.c.bf16 %v1032_v0, %v1030_v27 }
 0x1fc   : > { %v934_v33 = vadd.f32 %v933_v1, %v2030_v29  ;;  %v935_v34 = vpop.f32.mrb[29].mxu1  ;;  %v1051_v35 = vpack.c.bf16 %v1033_v31, %v1031_v28 }
 0x1fd   : > { %v936_v36 = vadd.f32 %v935_v34, %v2034_v30  ;;  %v937_v37 = vpop.f32.mrb[30].mxu1 }
 0x1fe   : > { %v1002_v38 = vmul.f32 0.2, %v934_v33  ;;  %v938_v39 = vadd.f32 %v937_v37, %v2030_v29  ;;  %v939_v61 = vpop.f32.mrb[31].mxu1  ;;  %1269 = vmatprep.mubr.bf16.mxu0 %v1051_v35  ;;  %vm970_vm13 = vcmp.gt.f32.partialorder %v934_v33, 0.0 }
 0x1ff   : > { %v1003_v60 = vmul.f32 0.2, %v936_v36  ;;  %v940_v63 = vadd.f32 %v939_v61, %v2034_v30  ;;  %1270 = vmatmul.mubr.bf16.gmra.mrb[56].mxu0 %v1050_v32  ;;  %vm971_vm14 = vcmp.gt.f32.partialorder %v936_v36, 0.0 }
 0x200   : > { %vm972_vm15 = vcmp.gt.f32.partialorder %v938_v39, 0.0  ;;  %v1004_v40 = vmul.f32 0.2, %v938_v39  ;;  %v1034_v42 = vsel %vm970_vm13, %v934_v33, %v1002_v38 }
 0x201   : > { %vm973_vm0 = vcmp.gt.f32.partialorder %v940_v63, 0.0  ;;  %v1005_v41 = vmul.f32 0.2, %v940_v63  ;;  %v1035_v44 = vsel %vm971_vm14, %v936_v36, %v1003_v60 }
 0x202   : > { %v1036_v43 = vsel %vm972_vm15, %v938_v39, %v1004_v40 }
 0x203   : > { %v1037_v45 = vsel %vm973_vm0, %v940_v63, %v1005_v41  ;;  %v1052_v46 = vpack.c.bf16 %v1036_v43, %v1034_v42 }
 0x204   : > { %v1053_v47 = vpack.c.bf16 %v1037_v45, %v1035_v44 }
 0x206   : > { %1277 = vmatprep.mubr.bf16.mxu0 %v1053_v47 }
 0x207   : > { %1278 = vmatmul.mubr.bf16.gmra.mrb[60].mxu0 %v1052_v46 }
 0x2a2   : > { %v1534_v29 = vpop.f32.mrb[32].mxu0 }
 0x2a3   : > { %v1535_v30 = vpop.f32.mrb[33].mxu0 }
 0x2a4   : > { %v1536_v49 = vadd.f32 %v1535_v30, %v1534_v29  ;;  %v1537_v50 = vpop.f32.mrb[34].mxu0 }
 0x2a5   : > { %v1538_v51 = vpop.f32.mrb[35].mxu0 }
 0x2a6   : > { %v1224_v52 = vadd.f32 %v1536_v49, %v2071_v48  ;;  %v1539_v53 = vadd.f32 %v1538_v51, %v1537_v50 }
 0x2a8   : > { %v1286_v54 = vsub.f32 0.0, %v1224_v52  ;;  %v1227_v55 = vadd.f32 %v1539_v53, %v2071_v48 }
 0x2aa   : > { %v1302_v56 = vmul.f32 1.442695, %v1286_v54  ;;  %v1287_v57 = vsub.f32 0.0, %v1227_v55  ;;  %v1540_v58 = vpop.f32.mrb[36].mxu0 }
 0x2ab   : > { %v1541_v59 = vpop.f32.mrb[37].mxu0 }
 0x2ac   : > { %1669 = vpow2.f32 %v1302_v56  ;;  %v1304_v62 = vmul.f32 1.442695, %v1287_v57  ;;  %v1542_v2 = vadd.f32 %v1541_v59, %v1540_v58  ;;  %v1543_v3 = vpop.f32.mrb[38].mxu0 }
 0x2ad   : > { %v1544_v4 = vpop.f32.mrb[39].mxu0 }
 0x2ae   : > { %1671 = vpow2.f32 %v1304_v62  ;;  %v1232_v5 = vadd.f32 %v1542_v2, %v2071_v48  ;;  %v1545_v6 = vadd.f32 %v1544_v4, %v1543_v3 }
 0x2b0   : > { %v1288_v7 = vsub.f32 0.0, %v1232_v5  ;;  %v1235_v8 = vadd.f32 %v1545_v6, %v2071_v48 }
 0x2b2   : > { %v1306_v9 = vmul.f32 1.442695, %v1288_v7  ;;  %v1289_v10 = vsub.f32 0.0, %v1235_v8  ;;  %v1546_v11 = vpop.f32.mrb[40].mxu0 }
 0x2b3   : > { %v1547_v12 = vpop.f32.mrb[41].mxu0 }
 0x2b4   : > { %1673 = vpow2.f32 %v1306_v9  ;;  %v1308_v13 = vmul.f32 1.442695, %v1289_v10  ;;  %v1548_v14 = vadd.f32 %v1547_v12, %v1546_v11  ;;  %v1549_v15 = vpop.f32.mrb[42].mxu0 }
 0x2b5   : > { %v1550_v16 = vpop.f32.mrb[43].mxu0 }
 0x2b6   : > { %v1670_v17 = vpop.eup %1669  ;;  %1675 = vpow2.f32 %v1308_v13  ;;  %v1240_v18 = vadd.f32 %v1548_v14, %v2071_v48  ;;  %v1551_v19 = vadd.f32 %v1550_v16, %v1549_v15 }
 0x2b7   : > { %v1334_v20 = vadd.f32 1.0, %v1670_v17 }
 0x2b8   : > { %v1672_v21 = vpop.eup %1671  ;;  %v1290_v22 = vsub.f32 0.0, %v1240_v18  ;;  %v1243_v23 = vadd.f32 %v1551_v19, %v2071_v48 }
 0x2b9   : > { %1677 = vrcp.f32 %v1334_v20  ;;  %v1335_v24 = vadd.f32 1.0, %v1672_v21 }
 0x2ba   : > { %v1310_v25 = vmul.f32 1.442695, %v1290_v22  ;;  %v1291_v26 = vsub.f32 0.0, %v1243_v23  ;;  %v1552_v27 = vpop.f32.mrb[44].mxu0 }
 0x2bb   : > { %1679 = vrcp.f32 %v1335_v24  ;;  %v1553_v0 = vpop.f32.mrb[45].mxu0 }
 0x2bc   : > { %1681 = vpow2.f32 %v1310_v25  ;;  %v1312_v1 = vmul.f32 1.442695, %v1291_v26  ;;  %v1554_v28 = vadd.f32 %v1553_v0, %v1552_v27  ;;  %v1555_v31 = vpop.f32.mrb[46].mxu0 }
 0x2bd   : > { %v1556_v32 = vpop.f32.mrb[47].mxu0 }
 0x2be   : > { %v1674_v33 = vpop.eup %1673  ;;  %1683 = vpow2.f32 %v1312_v1  ;;  %v1248_v34 = vadd.f32 %v1554_v28, %v2071_v48  ;;  %v1557_v35 = vadd.f32 %v1556_v32, %v1555_v31 }
 0x2bf   : > { %v1336_v36 = vadd.f32 1.0, %v1674_v33 }
 0x2c0   : > { %v1676_v37 = vpop.eup %1675  ;;  %v1292_v38 = vsub.f32 0.0, %v1248_v34  ;;  %v1251_v39 = vadd.f32 %v1557_v35, %v2071_v48 }
 0x2c1   : > { %1685 = vrcp.f32 %v1336_v36  ;;  %v1337_v61 = vadd.f32 1.0, %v1676_v37 }
 0x2c2   : > { %v1314_v60 = vmul.f32 1.442695, %v1292_v38  ;;  %v1293_v63 = vsub.f32 0.0, %v1251_v39  ;;  %v1558_v40 = vpop.f32.mrb[48].mxu0 }
 0x2c3   : > { %v1678_v41 = vpop.eup %1677  ;;  %1687 = vrcp.f32 %v1337_v61  ;;  %v1559_v42 = vpop.f32.mrb[49].mxu0 }
 0x2c4   : > { %1366 = vst [vmem:[%s2085_s17] sm:$0xff] %v1678_v41  ;;  %1689 = vpow2.f32 %v1314_v60  ;;  %v1316_v43 = vmul.f32 1.442695, %v1293_v63  ;;  %v1560_v44 = vadd.f32 %v1559_v42, %v1558_v40  ;;  %v1561_v45 = vpop.f32.mrb[50].mxu0 }
 0x2c5   : > { %v1680_v46 = vpop.eup %1679  ;;  %v1562_v47 = vpop.f32.mrb[51].mxu0 }
 0x2c6   : > { %v1682_v29 = vpop.eup %1681  ;;  %1367 = vst [vmem:[%s2085_s17 + $0x8] sm:$0xff] %v1680_v46  ;;  %1691 = vpow2.f32 %v1316_v43  ;;  %v1256_v30 = vadd.f32 %v1560_v44, %v2071_v48  ;;  %v1563_v49 = vadd.f32 %v1562_v47, %v1561_v45 }
 0x2c7   : > { %v1338_v50 = vadd.f32 1.0, %v1682_v29 }
 0x2c8   : > { %v1684_v51 = vpop.eup %1683  ;;  %v1294_v52 = vsub.f32 0.0, %v1256_v30  ;;  %v1259_v53 = vadd.f32 %v1563_v49, %v2071_v48 }
 0x2c9   : > { %1693 = vrcp.f32 %v1338_v50  ;;  %v1339_v54 = vadd.f32 1.0, %v1684_v51 }
 0x2ca   : > { %v1318_v55 = vmul.f32 1.442695, %v1294_v52  ;;  %v1295_v56 = vsub.f32 0.0, %v1259_v53  ;;  %v1564_v57 = vpop.f32.mrb[52].mxu0 }
 0x2cb   : > { %v1686_v58 = vpop.eup %1685  ;;  %1695 = vrcp.f32 %v1339_v54  ;;  %v1565_v59 = vpop.f32.mrb[53].mxu0 }
 0x2cc   : > { %1368 = vst [vmem:[%s2085_s17 + $0x10] sm:$0xff] %v1686_v58  ;;  %1697 = vpow2.f32 %v1318_v55  ;;  %v1320_v62 = vmul.f32 1.442695, %v1295_v56  ;;  %v1566_v2 = vadd.f32 %v1565_v59, %v1564_v57  ;;  %v1567_v3 = vpop.f32.mrb[54].mxu0 }
 0x2cd   : > { %v1688_v4 = vpop.eup %1687  ;;  %v1568_v5 = vpop.f32.mrb[55].mxu0 }
 0x2ce   : > { %v1690_v6 = vpop.eup %1689  ;;  %1369 = vst [vmem:[%s2085_s17 + $0x18] sm:$0xff] %v1688_v4  ;;  %1699 = vpow2.f32 %v1320_v62  ;;  %v1264_v7 = vadd.f32 %v1566_v2, %v2071_v48  ;;  %v1569_v8 = vadd.f32 %v1568_v5, %v1567_v3 }
 0x2cf   : > { %v1340_v9 = vadd.f32 1.0, %v1690_v6 }
 0x2d0   : > { %v1692_v10 = vpop.eup %1691  ;;  %v1296_v11 = vsub.f32 0.0, %v1264_v7  ;;  %v1267_v12 = vadd.f32 %v1569_v8, %v2071_v48 }
 0x2d1   : > { %1701 = vrcp.f32 %v1340_v9  ;;  %v1341_v13 = vadd.f32 1.0, %v1692_v10 }
 0x2d2   : > { %v1322_v14 = vmul.f32 1.442695, %v1296_v11  ;;  %v1297_v15 = vsub.f32 0.0, %v1267_v12  ;;  %v1570_v16 = vpop.f32.mrb[56].mxu0 }
 0x2d3   : > { %v1694_v17 = vpop.eup %1693  ;;  %1703 = vrcp.f32 %v1341_v13  ;;  %v1571_v18 = vpop.f32.mrb[57].mxu0 }
 0x2d4   : > { %1370 = vst [vmem:[%s2085_s17 + $0x20] sm:$0xff] %v1694_v17  ;;  %1705 = vpow2.f32 %v1322_v14  ;;  %v1324_v19 = vmul.f32 1.442695, %v1297_v15  ;;  %v1572_v20 = vadd.f32 %v1571_v18, %v1570_v16  ;;  %v1573_v21 = vpop.f32.mrb[58].mxu0 }
 0x2d5   : > { %v1696_v22 = vpop.eup %1695  ;;  %v1574_v23 = vpop.f32.mrb[59].mxu0 }
 0x2d6   : > { %v1698_v24 = vpop.eup %1697  ;;  %1371 = vst [vmem:[%s2085_s17 + $0x28] sm:$0xff] %v1696_v22  ;;  %1707 = vpow2.f32 %v1324_v19  ;;  %v1272_v25 = vadd.f32 %v1572_v20, %v2071_v48  ;;  %v1575_v26 = vadd.f32 %v1574_v23, %v1573_v21 }
 0x2d7   : > { %v1342_v27 = vadd.f32 1.0, %v1698_v24 }
 0x2d8   : > { %v1700_v0 = vpop.eup %1699  ;;  %v1298_v1 = vsub.f32 0.0, %v1272_v25  ;;  %v1275_v28 = vadd.f32 %v1575_v26, %v2071_v48 }
 0x2d9   : > { %1709 = vrcp.f32 %v1342_v27  ;;  %v1343_v31 = vadd.f32 1.0, %v1700_v0 }
 0x2da   : > { %v1326_v32 = vmul.f32 1.442695, %v1298_v1  ;;  %v1299_v33 = vsub.f32 0.0, %v1275_v28  ;;  %v1576_v34 = vpop.f32.mrb[60].mxu0 }
 0x2db   : > { %v1702_v35 = vpop.eup %1701  ;;  %1711 = vrcp.f32 %v1343_v31  ;;  %v1577_v36 = vpop.f32.mrb[61].mxu0 }
 0x2dc   : > { %1372 = vst [vmem:[%s2085_s17 + $0x30] sm:$0xff] %v1702_v35  ;;  %1713 = vpow2.f32 %v1326_v32  ;;  %v1328_v37 = vmul.f32 1.442695, %v1299_v33  ;;  %v1578_v38 = vadd.f32 %v1577_v36, %v1576_v34  ;;  %v1579_v39 = vpop.f32.mrb[62].mxu0 }
 0x2dd   : > { %v1704_v61 = vpop.eup %1703  ;;  %v1580_v60 = vpop.f32.mrb[63].mxu0 }
 0x2de   : > { %v1706_v63 = vpop.eup %1705  ;;  %1373 = vst [vmem:[%s2085_s17 + $0x38] sm:$0xff] %v1704_v61  ;;  %1715 = vpow2.f32 %v1328_v37  ;;  %v1280_v40 = vadd.f32 %v1578_v38, %v2071_v48  ;;  %v1581_v41 = vadd.f32 %v1580_v60, %v1579_v39 }
 0x2df   : > { %v1344_v42 = vadd.f32 1.0, %v1706_v63 }
 0x2e0   : > { %v1708_v43 = vpop.eup %1707  ;;  %v1300_v44 = vsub.f32 0.0, %v1280_v40  ;;  %v1283_v45 = vadd.f32 %v1581_v41, %v2071_v48 }
 0x2e1   : > { %1717 = vrcp.f32 %v1344_v42  ;;  %v1345_v46 = vadd.f32 1.0, %v1708_v43 }
 0x2e2   : > { %v1330_v47 = vmul.f32 1.442695, %v1300_v44  ;;  %v1301_v29 = vsub.f32 0.0, %v1283_v45 }
 0x2e3   : > { %v1710_v30 = vpop.eup %1709  ;;  %1719 = vrcp.f32 %v1345_v46 }
 0x2e4   : > { %1374 = vst [vmem:[%s2085_s17 + $0x40] sm:$0xff] %v1710_v30  ;;  %1721 = vpow2.f32 %v1330_v47  ;;  %v1332_v49 = vmul.f32 1.442695, %v1301_v29 }
 0x2e5   : > { %v1712_v50 = vpop.eup %1711 }
 0x2e6   : > { %v1714_v51 = vpop.eup %1713  ;;  %1375 = vst [vmem:[%s2085_s17 + $0x48] sm:$0xff] %v1712_v50  ;;  %1723 = vpow2.f32 %v1332_v49 }
 0x2e7   : > { %v1346_v52 = vadd.f32 1.0, %v1714_v51 }
 0x2e8   : > { %v1716_v53 = vpop.eup %1715 }
 0x2e9   : > { %1725 = vrcp.f32 %v1346_v52  ;;  %v1347_v48 = vadd.f32 1.0, %v1716_v53 }
 0x2eb   : > { %v1718_v54 = vpop.eup %1717  ;;  %1727 = vrcp.f32 %v1347_v48 }
 0x2ec   : > { %1376 = vst [vmem:[%s2085_s17 + $0x50] sm:$0xff] %v1718_v54 }
 0x2ed   : > { %v1720_v55 = vpop.eup %1719 }
 0x2ee   : > { %v1722_v56 = vpop.eup %1721  ;;  %1377 = vst [vmem:[%s2085_s17 + $0x58] sm:$0xff] %v1720_v55 }
 0x2ef   : > { %v1348_v57 = vadd.f32 1.0, %v1722_v56 }
 0x2f0   : > { %v1724_v58 = vpop.eup %1723 }
 0x2f1   : > { %1729 = vrcp.f32 %v1348_v57  ;;  %v1349_v59 = vadd.f32 1.0, %v1724_v58 }
 0x2f3   : > { %v1726_v62 = vpop.eup %1725  ;;  %1731 = vrcp.f32 %v1349_v59 }
 0x2f4   : > { %1378 = vst [vmem:[%s2085_s17 + $0x60] sm:$0xff] %v1726_v62 }
 0x2f5   : > { %v1728_v2 = vpop.eup %1727 }
 0x2f6   : > { %1379 = vst [vmem:[%s2085_s17 + $0x68] sm:$0xff] %v1728_v2 }
 0x2fb   : > { %v1730_v3 = vpop.eup %1729 }
 0x2fc   : > { %1380 = vst [vmem:[%s2085_s17 + $0x70] sm:$0xff] %v1730_v3 }
 0x2fd   : > { %v1732_v4 = vpop.eup %1731 }
 0x2fe   : > { %1381 = vst [vmem:[%s2085_s17 + $0x78] sm:$0xff] %v1732_v4 }
 0x2ff PF: > { %s17_s24 = sadd.s32 1, %s1739_s24  }
 0x300   : > { %p14_p4 = scmp.ge.s32.totalorder %s17_s24, 4  }
 0x302   :  { %16 = sbr.rel (!%p14_p4) target bundleno = 1 (0x1), region = 78 }

</bundles_post_ra>
